<compile_context>
chip_gen: v6e
topology: v6e:2x2x1
jax: 0.10.0
libtpu: 0.0.40
codegen_flags: <defaults>
</compile_context>

<pallas_src>
import functools

import jax
import jax.numpy as jnp
from jax.experimental import pallas as pl
from jax.experimental.pallas import tpu as pltpu


def _a_net_kernel(s_ref, w1_ref, b1_ref, w2_ref, b2_ref, w3_ref, b3_ref,
                  out_ref, *, a_range):
    """Fused 3-layer MLP: tanh(W3 relu(W2 relu(W1 s))) * a_range."""
    # Matmul operands are fed in the weight dtype (f32, or bf16 if the weights
    # were pre-cast); accumulation, bias add, ReLU and tanh stay in f32.
    x = s_ref[...]
    h1 = jnp.dot(x.astype(w1_ref.dtype), w1_ref[...],
                 preferred_element_type=jnp.float32)
    h1 = jnp.maximum(h1 + b1_ref[...], 0.0)

    h2 = jnp.dot(h1.astype(w2_ref.dtype), w2_ref[...],
                 preferred_element_type=jnp.float32)
    h2 = jnp.maximum(h2 + b2_ref[...], 0.0)

    a = jnp.dot(h2.astype(w3_ref.dtype), w3_ref[...],
                preferred_element_type=jnp.float32)
    a = jnp.tanh(a + b3_ref[...])

    out_ref[...] = (a * a_range).astype(out_ref.dtype)


def prepare_params(params, *, weight_dtype=jnp.float32):
    """One-time (hoisted) param preparation.

    Optionally casts only the weight matrices to `weight_dtype` (e.g. bf16 on
    v6e/v7x for single-pass MXU + halved weight traffic).  Biases are kept f32
    so bias add / ReLU / tanh stay on the f32 VPU/EUP path (matters on v5e).
    """
    out = dict(params)
    for k in ("w1", "w2", "w3"):
        out[k] = params[k].astype(weight_dtype)
    return out


def a_net_forward(s, params, a_range, *, batch_tile=1024):
    """Run the A_net forward pass with Pallas.

    s:       (B, state_n) float32
    params:  dict with w1 (state_n, width), b1 (1, width),
                       w2 (width, width),   b2 (1, width),
                       w3 (width, action_n), b3 (1, action_n)
             (weights stored transposed vs. PyTorch: y = x @ W + b)
    a_range: python float (== a_range[-1] in the PyTorch module)
    """
    B, state_n = s.shape
    width = params["w1"].shape[1]
    action_n = params["w3"].shape[1]

    kernel = functools.partial(_a_net_kernel, a_range=float(a_range))
    operands = (s, params["w1"], params["b1"], params["w2"], params["b2"],
                params["w3"], params["b3"])

    # Advisory cost hint for the XLA scheduler (real flops / bytes, no padding).
    flops = 2 * B * (state_n * width + width * width + width * action_n)
    bytes_accessed = (
        int(s.size) * s.dtype.itemsize                    # input read
        + B * action_n * 4                                # output write
        + sum(int(p.size) * p.dtype.itemsize for p in operands[1:]))  # weights
    cost = pl.CostEstimate(flops=flops, transcendentals=B * action_n,
                           bytes_accessed=bytes_accessed)

    if B <= batch_tile:
        # Tiny-batch path: the whole problem fits in VMEM; no grid, no
        # pipelining machinery, output written at its real width.
        vmem = lambda: pl.BlockSpec(memory_space=pltpu.MemorySpace.VMEM)
        return pl.pallas_call(
            kernel,
            out_shape=jax.ShapeDtypeStruct((B, action_n), jnp.float32),
            in_specs=[vmem() for _ in operands],
            out_specs=vmem(),
            cost_estimate=cost,
        )(*operands)

    # Batched path: tile only the batch axis; grid = cdiv handles a ragged
    # last block (reads bounded, writeback masked).  Weights/biases stay
    # VMEM-resident across grid steps (index_map always returns block (0, 0)).
    num_tiles = pl.cdiv(B, batch_tile)
    resident = lambda arr: pl.BlockSpec(arr.shape, lambda i: (0, 0))

    # Only raise the scoped-VMEM limit if the double-buffered tiles + resident
    # weights actually exceed the smallest default (16 MiB on v5e).
    tile_bytes = 2 * batch_tile * (state_n + action_n) * 4        # in+out, x2 buf
    weight_bytes = 2 * sum(int(p.size) * p.dtype.itemsize for p in operands[1:])
    need = tile_bytes + weight_bytes
    vmem_limit = min(2 * need + (4 << 20), 48 << 20) if need > (12 << 20) else None

    # TODO(synk): on v7x, confirm in a profile that the batch axis is sharded
    # across both TensorCores; if not, switch to pltpu.CORE_PARALLEL.
    out = pl.pallas_call(
        kernel,
        out_shape=jax.ShapeDtypeStruct((B, action_n), jnp.float32),
        grid=(num_tiles,),
        in_specs=[
            pl.BlockSpec((batch_tile, state_n), lambda i: (i, 0)),
            resident(params["w1"]),
            resident(params["b1"]),
            resident(params["w2"]),
            resident(params["b2"]),
            resident(params["w3"]),
            resident(params["b3"]),
        ],
        out_specs=pl.BlockSpec((batch_tile, action_n), lambda i: (i, 0)),
        compiler_params=pltpu.CompilerParams(
            dimension_semantics=("parallel",),
            vmem_limit_bytes=vmem_limit),
        cost_estimate=cost,
    )(*operands)
    return out


def orthogonal_init(key, in_dim, out_dim, gain):
    """Mimic torch.nn.init.orthogonal_ (gain * orthogonal matrix).

    Returns weight of shape (in_dim, out_dim) (already transposed for x @ W).
    """
    rows, cols = out_dim, in_dim  # PyTorch weight shape (out, in)
    a = jax.random.normal(key, (max(rows, cols), min(rows, cols)),
                          dtype=jnp.float32)
    q, r = jnp.linalg.qr(a)
    q = q * jnp.sign(jnp.diagonal(r))
    if rows < cols:
        q = q.T
    w_torch = gain * q[:rows, :cols]       # (out, in), like PyTorch
    return w_torch.T                        # (in, out) for x @ W


def init_a_net_params(key, state_n, width, action_n):
    std = jnp.sqrt(2.0)
    k1, k2, k3 = jax.random.split(key, 3)
    return {
        "w1": orthogonal_init(k1, state_n, width, std),
        "b1": jnp.zeros((1, width), jnp.float32),
        "w2": orthogonal_init(k2, width, width, std),
        "b2": jnp.zeros((1, width), jnp.float32),
        "w3": orthogonal_init(k3, width, action_n, std),
        "b3": jnp.zeros((1, action_n), jnp.float32),
    }


def _reference(s, params, a_range):
    h1 = jnp.maximum(s @ params["w1"].astype(jnp.float32) + params["b1"], 0.0)
    h2 = jnp.maximum(h1 @ params["w2"].astype(jnp.float32) + params["b2"], 0.0)
    return jnp.tanh(h2 @ params["w3"].astype(jnp.float32) + params["b3"]) * a_range


if __name__ == "__main__":
    # width aligned to the 128-lane MXU/vreg width; small state/action dims.
    state_n, width, action_n = 16, 128, 8
    a_range = (-2.0, 2.0)  # module uses a_range[-1]

    key = jax.random.PRNGKey(0)
    k_params, k_big, k_small = jax.random.split(key, 3)
    params = init_a_net_params(k_params, state_n, width, action_n)
    params = prepare_params(params)   # hoisted once; pass weight_dtype=bf16 on v6e/v7x

    # 1) Batched path: grid over the batch axis with a ragged last block,
    #    weights VMEM-resident, output written at its real (B, action_n) width.
    s_big = jax.random.normal(k_big, (320, state_n), dtype=jnp.float32)
    act_big = jax.block_until_ready(
        a_net_forward(s_big, params, a_range[-1], batch_tile=128))
    ref_big = _reference(s_big, params, a_range[-1])
    assert act_big.shape == (320, action_n)
    assert jnp.allclose(act_big, ref_big, atol=1e-4), "batched path mismatch"

    # 2) Tiny-batch path: no grid, everything pinned in VMEM.
    s_small = jax.random.normal(k_small, (8, state_n), dtype=jnp.float32)
    act_small = jax.block_until_ready(
        a_net_forward(s_small, params, a_range[-1]))
    ref_small = _reference(s_small, params, a_range[-1])
    assert act_small.shape == (8, action_n)
    assert jnp.allclose(act_small, ref_small, atol=1e-4), "tiny path mismatch"

    print("KERNEL_OK")
</pallas_src>

<mosaic_0001>
module attributes {stable_mosaic.version = 11 : i64} {
  func.func @_a_net_kernel(%arg0: i32, %arg1: memref<128x16xf32, #tpu.memory_space<vmem>>, %arg2: memref<16x128xf32, #tpu.memory_space<vmem>>, %arg3: memref<1x128xf32, #tpu.memory_space<vmem>>, %arg4: memref<128x128xf32, #tpu.memory_space<vmem>>, %arg5: memref<1x128xf32, #tpu.memory_space<vmem>>, %arg6: memref<128x8xf32, #tpu.memory_space<vmem>>, %arg7: memref<1x8xf32, #tpu.memory_space<vmem>>, %arg8: memref<128x8xf32, #tpu.memory_space<vmem>>) attributes {dimension_semantics = [#tpu.dimension_semantics<parallel>], iteration_bounds = array<i64: 3>, scalar_prefetch = 0 : i64, scratch_operands = 0 : i64, tpu.core_type = #tpu.core_type<tc>, window_params = [{transform_indices = @transform_0, window_bounds = array<i64: 128, 16>}, {pipeline_mode = #tpu.pipeline_mode<synchronous>, transform_indices = @transform_1, window_bounds = array<i64: 16, 128>}, {pipeline_mode = #tpu.pipeline_mode<synchronous>, transform_indices = @transform_2, window_bounds = array<i64: 1, 128>}, {pipeline_mode = #tpu.pipeline_mode<synchronous>, transform_indices = @transform_3, window_bounds = array<i64: 128, 128>}, {pipeline_mode = #tpu.pipeline_mode<synchronous>, transform_indices = @transform_4, window_bounds = array<i64: 1, 128>}, {pipeline_mode = #tpu.pipeline_mode<synchronous>, transform_indices = @transform_5, window_bounds = array<i64: 128, 8>}, {pipeline_mode = #tpu.pipeline_mode<synchronous>, transform_indices = @transform_6, window_bounds = array<i64: 1, 8>}, {transform_indices = @transform_7, window_bounds = array<i64: 128, 8>}]} {
    %c0 = arith.constant 0 : index
    %c0_0 = arith.constant 0 : index
    %0 = vector.load %arg1[%c0, %c0_0] : memref<128x16xf32, #tpu.memory_space<vmem>>, vector<128x16xf32>
    %c0_1 = arith.constant 0 : index
    %c0_2 = arith.constant 0 : index
    %1 = vector.load %arg2[%c0_1, %c0_2] : memref<16x128xf32, #tpu.memory_space<vmem>>, vector<16x128xf32>
    %cst = arith.constant dense<0.000000e+00> : vector<128x128xf32>
    %2 = tpu.matmul %0, %1, %cst {dimension_numbers = #tpu.dot_dimension_numbers<[1], [0], [0], [1], [0, 0, 1, 1], [], []>} : vector<128x16xf32>, vector<16x128xf32>, vector<128x128xf32> -> vector<128x128xf32>
    %c0_3 = arith.constant 0 : index
    %c0_4 = arith.constant 0 : index
    %3 = vector.load %arg3[%c0_3, %c0_4] : memref<1x128xf32, #tpu.memory_space<vmem>>, vector<1x128xf32>
    %4 = vector.broadcast %3 : vector<1x128xf32> to vector<128x128xf32>
    %5 = arith.addf %2, %4 : vector<128x128xf32>
    %cst_5 = arith.constant 0.000000e+00 : f32
    %6 = vector.broadcast %cst_5 : f32 to vector<128x128xf32>
    %7 = arith.maximumf %5, %6 : vector<128x128xf32>
    %c0_6 = arith.constant 0 : index
    %c0_7 = arith.constant 0 : index
    %8 = vector.load %arg4[%c0_6, %c0_7] : memref<128x128xf32, #tpu.memory_space<vmem>>, vector<128x128xf32>
    %cst_8 = arith.constant dense<0.000000e+00> : vector<128x128xf32>
    %9 = tpu.matmul %7, %8, %cst_8 {dimension_numbers = #tpu.dot_dimension_numbers<[1], [0], [0], [1], [0, 0, 1, 1], [], []>} : vector<128x128xf32>, vector<128x128xf32>, vector<128x128xf32> -> vector<128x128xf32>
    %c0_9 = arith.constant 0 : index
    %c0_10 = arith.constant 0 : index
    %10 = vector.load %arg5[%c0_9, %c0_10] : memref<1x128xf32, #tpu.memory_space<vmem>>, vector<1x128xf32>
    %11 = vector.broadcast %10 : vector<1x128xf32> to vector<128x128xf32>
    %12 = arith.addf %9, %11 : vector<128x128xf32>
    %cst_11 = arith.constant 0.000000e+00 : f32
    %13 = vector.broadcast %cst_11 : f32 to vector<128x128xf32>
    %14 = arith.maximumf %12, %13 : vector<128x128xf32>
    %c0_12 = arith.constant 0 : index
    %c0_13 = arith.constant 0 : index
    %15 = vector.load %arg6[%c0_12, %c0_13] : memref<128x8xf32, #tpu.memory_space<vmem>>, vector<128x8xf32>
    %cst_14 = arith.constant dense<0.000000e+00> : vector<128x8xf32>
    %16 = tpu.matmul %14, %15, %cst_14 {dimension_numbers = #tpu.dot_dimension_numbers<[1], [0], [0], [1], [0, 0, 1, 1], [], []>} : vector<128x128xf32>, vector<128x8xf32>, vector<128x8xf32> -> vector<128x8xf32>
    %c0_15 = arith.constant 0 : index
    %c0_16 = arith.constant 0 : index
    %17 = vector.load %arg7[%c0_15, %c0_16] : memref<1x8xf32, #tpu.memory_space<vmem>>, vector<1x8xf32>
    %18 = vector.broadcast %17 : vector<1x8xf32> to vector<128x8xf32>
    %19 = arith.addf %16, %18 : vector<128x8xf32>
    %20 = math.tanh %19 : vector<128x8xf32>
    %cst_17 = arith.constant 2.000000e+00 : f32
    %21 = vector.broadcast %cst_17 : f32 to vector<128x8xf32>
    %22 = arith.mulf %20, %21 : vector<128x8xf32>
    %c0_18 = arith.constant 0 : index
    %c0_19 = arith.constant 0 : index
    %23 = vector.load %arg8[%c0_18, %c0_19] : memref<128x8xf32, #tpu.memory_space<vmem>>, vector<128x8xf32>
    tpu.vector_store %arg8[%c0_18, %c0_19], %22 {strides = array<i32>} : memref<128x8xf32, #tpu.memory_space<vmem>>, vector<128x8xf32>,
    return
  }
  func.func @transform_0(%arg0: i32) -> (i32, i32) {
    %c0_i32 = arith.constant 0 : i32
    %c0_i32_0 = arith.constant 0 : i32
    return %arg0, %c0_i32 : i32, i32
  }
  func.func @transform_1(%arg0: i32) -> (i32, i32) {
    %c0_i32 = arith.constant 0 : i32
    %c0_i32_0 = arith.constant 0 : i32
    %c0_i32_1 = arith.constant 0 : i32
    return %c0_i32, %c0_i32_0 : i32, i32
  }
  func.func @transform_2(%arg0: i32) -> (i32, i32) {
    %c0_i32 = arith.constant 0 : i32
    %c0_i32_0 = arith.constant 0 : i32
    %c0_i32_1 = arith.constant 0 : i32
    return %c0_i32, %c0_i32_0 : i32, i32
  }
  func.func @transform_3(%arg0: i32) -> (i32, i32) {
    %c0_i32 = arith.constant 0 : i32
    %c0_i32_0 = arith.constant 0 : i32
    %c0_i32_1 = arith.constant 0 : i32
    return %c0_i32, %c0_i32_0 : i32, i32
  }
  func.func @transform_4(%arg0: i32) -> (i32, i32) {
    %c0_i32 = arith.constant 0 : i32
    %c0_i32_0 = arith.constant 0 : i32
    %c0_i32_1 = arith.constant 0 : i32
    return %c0_i32, %c0_i32_0 : i32, i32
  }
  func.func @transform_5(%arg0: i32) -> (i32, i32) {
    %c0_i32 = arith.constant 0 : i32
    %c0_i32_0 = arith.constant 0 : i32
    %c0_i32_1 = arith.constant 0 : i32
    return %c0_i32, %c0_i32_0 : i32, i32
  }
  func.func @transform_6(%arg0: i32) -> (i32, i32) {
    %c0_i32 = arith.constant 0 : i32
    %c0_i32_0 = arith.constant 0 : i32
    %c0_i32_1 = arith.constant 0 : i32
    return %c0_i32, %c0_i32_0 : i32, i32
  }
  func.func @transform_7(%arg0: i32) -> (i32, i32) {
    %c0_i32 = arith.constant 0 : i32
    %c0_i32_0 = arith.constant 0 : i32
    return %arg0, %c0_i32 : i32, i32
  }
}

</mosaic_0001>

<bundles_post_ra>
// kernel: tpu_custom_call.1
= control target key start
LH: loop header
LB: loop body
LE: loop exit
PB: predicated region body
PF: predicated region fallthrough
CT: control target
= control target key end

     0   :  { %s1728_s24 = smov 0   ;;  %s1730_s25 = smov 0   ;;  %s2063_s0 = inlined_call_operand.vmem [shape: f32[320,16], index: 0, kind: input, shape index: {}]   ;;  %s2064_s1 = inlined_call_operand.vmem [shape: f32[16,128], index: 1, kind: input, shape index: {}]   ;;  %s2065_s2 = inlined_call_operand.vmem [shape: f32[1,128], index: 2, kind: input, shape index: {}]   ;;  %s2066_s3 = inlined_call_operand.vmem [shape: f32[128,128], index: 3, kind: input, shape index: {}]   ;;  %s2067_s4 = inlined_call_operand.vmem [shape: f32[1,128], index: 4, kind: input, shape index: {}]   ;;  %s2068_s5 = inlined_call_operand.vmem [shape: f32[128,8], index: 5, kind: input, shape index: {}]   ;;  %s2069_s6 = inlined_call_operand.vmem [shape: f32[1,8], index: 6, kind: input, shape index: {}]   ;;  %s2070_s7 = inlined_call_operand.vmem [shape: f32[320,8], index: 7, kind: output, shape index: {}]  }
   0x1   :  { %s1732_s26 = smov 0  }
   0x2 LB: > { %s1741_s27 = sadd.s32 4294967295, %s1654_s26   ;;  %s1743_s28 = sadd.s32 1, %s1654_s26   ;;  %s1654_s26 = sphi %s1732_s26, %s2077_s26   ;;  %s1650_s25 = sphi %s1730_s25, %s2076_s25   ;;  %s1646_s24 = sphi %s1728_s24, %s2075_s24  }
   0x3   : > { %s173_s29 = ssub.s32 %s1654_s26, %s1743_s28  ;;  %s176_s30 = sadd.s32 1, %s1650_s25 }
   0x4   : > { %p174_p0 = scmp.eq.s32.totalorder %s173_s29, 0  ;;  %p186_p1 = scmp.ne.s32.totalorder %s1650_s25, %s1646_s24 }
   0x5   : > { %p187_p2 = scmp.eq.s32.totalorder %s1741_s27, 2  ;;  %p1215_p3 = scmp.ge.s32.totalorder %s1654_s26, 1 }
   0x6   : > { %s1751_s8 = scalar_select %p174_p0, %s1650_s25, %s176_s30  }
   0x7   : > { %p1753_p4 = por %p187_p2, %p186_p1  ;;  %p246_p5 = scmp.lt.s32.totalorder %s1654_s26, 4 }
   0x9   : > { %p247_p6 = pnand %p1215_p3, %p246_p5 }
   0xa   : > { %s1764_s14 = sshll.u32 (!%p247_p6), %s1741_s27, 4  ;;  %s278_s30 = sand.u32 (!%p247_p6), 1, %s1646_s24  }
   0xb   : > { %250 = sbr.rel (%p247_p6) target bundleno = 705 (0x2c1), region = 48  ;;  %p286_p7 = scmp.lt.s32.totalorder (!%p247_p6), %s1764_s14, 39 }
   0xc   : > { %s1216_s11 = sshll.u32 (!%p247_p6), %s278_s30, 7 }
   0xd   : > { %s1922_s24 = scalar_lea.vmem (!%p247_p6), [#allocation2], %s1216_s11  }
  0x10   : > { %v317_v0 = vld [vmem:[%s2064_s1 + $0x8] sm:$0xff]  ;;  %v316_v1 = vld [vmem:[%s2064_s1] sm:$0xff]  ;;  %v550_v2 = vld [vmem:[%s2066_s3 + $0x78] sm:$0xff]  ;;  %s287_s21 = scalar_select %p286_p7, %s1764_s14, 39  ;;  %vm325_vm0 = vcmask 130048   ;;  %vm919_vm1 = vcmask 64512  }
  0x11   : > { %1340 = vmatprep.subr.mxu0 %v317_v0  ;;  %1368 = vmatprep.subr.mxu1 %v550_v2  ;;  %v549_v3 = vld [vmem:[%s2066_s3 + $0x70] sm:$0xff]  ;;  %v548_v4 = vld [vmem:[%s2066_s3 + $0x68] sm:$0xff]  ;;  %v547_v5 = vld [vmem:[%s2066_s3 + $0x60] sm:$0xff]  ;;  %s944_s12 = ssub.s32 (%p1753_p4), 40, %s1764_s14  ;;  %s1255_s13 = sshll.u32 (%p1753_p4), %s1741_s27, 7 }
  0x12   : > { %1341 = vmatpush3.msra.mxu0 %v317_v0  ;;  %1369 = vmatpush3.msra.mxu1 %v550_v2  ;;  %s1218_s26 = sshll.u32 %s287_s21, 3  ;;  %v546_v6 = vld [vmem:[%s2066_s3 + $0x58] sm:$0xff]  ;;  %v545_v10 = vld [vmem:[%s2066_s3 + $0x50] sm:$0xff]  ;;  %v544_v12 = vld [vmem:[%s2066_s3 + $0x48] sm:$0xff]  ;;  %p945_p8 = scmp.lt.s32.totalorder (%p1753_p4), %s944_s12, 16 }
  0x13   : > { %1342 = vmatprep.subr.mxu0 %v316_v1  ;;  %1370 = vmatprep.subr.mxu1 %v549_v3  ;;  %s1783_s10 = scalar_lea.vmem %s2063_s0, %s1218_s26  ;;  %v543_v14 = vld [vmem:[%s2066_s3 + $0x40] sm:$0xff]  ;;  %v542_v16 = vld [vmem:[%s2066_s3 + $0x38] sm:$0xff]  ;;  %v541_v18 = vld [vmem:[%s2066_s3 + $0x30] sm:$0xff]  ;;  %s1970_s17 = scalar_lea.vmem (%p1753_p4), %s2070_s7, %s1255_s13  }
  0x14   : > { %1343 = vmatpush3.msra.mxu0 %v316_v1  ;;  %1371 = vmatpush3.msra.mxu1 %v549_v3  ;;  %v300_v7 = vld [vmem:[%s1783_s10] sm:$0xff]  ;;  %v301_v8 = vld [vmem:[%s1783_s10 + $0x8] sm:$0xff]  ;;  %v302_v9 = vld [vmem:[%s1783_s10 + $0x10] sm:$0xff] }
  0x15   : > { %1372 = vmatprep.subr.mxu1 %v548_v4  ;;  %1344 = vmatprep.mubr.msk.f32.mxu0 %vm325_vm0, %v300_v7  ;;  %v303_v11 = vld [vmem:[%s1783_s10 + $0x18] sm:$0xff]  ;;  %v304_v13 = vld [vmem:[%s1783_s10 + $0x20] sm:$0xff]  ;;  %v305_v15 = vld [vmem:[%s1783_s10 + $0x28] sm:$0xff] }
  0x16   : > { %1373 = vmatpush3.msra.mxu1 %v548_v4  ;;  %1345 = vmatmul.mubr.msk.f32.vlgmr.msra.gmra.mxu0 %vm325_vm0, %v301_v8  ;;  %v306_v17 = vld [vmem:[%s1783_s10 + $0x30] sm:$0xff]  ;;  %v307_v19 = vld [vmem:[%s1783_s10 + $0x38] sm:$0xff]  ;;  %v540_v20 = vld [vmem:[%s2066_s3 + $0x28] sm:$0xff] }
  0x17   : > { %1374 = vmatprep.subr.mxu1 %v547_v5  ;;  %1347 = vmatprep.mubr.msk.f32.mxu0 %vm325_vm0, %v302_v9  ;;  %v308_v21 = vld [vmem:[%s1783_s10 + $0x40] sm:$0xff]  ;;  %v309_v23 = vld [vmem:[%s1783_s10 + $0x48] sm:$0xff]  ;;  %v310_v24 = vld [vmem:[%s1783_s10 + $0x50] sm:$0xff] }
  0x18   : > { %1375 = vmatpush3.msra.mxu1 %v547_v5  ;;  %v539_v22 = vld [vmem:[%s2066_s3 + $0x20] sm:$0xff]  ;;  %v311_v25 = vld [vmem:[%s1783_s10 + $0x58] sm:$0xff]  ;;  %v313_v27 = vld [vmem:[%s1783_s10 + $0x68] sm:$0xff] }
  0x19   : > { %1376 = vmatprep.subr.mxu1 %v546_v6  ;;  %v312_v26 = vld [vmem:[%s1783_s10 + $0x60] sm:$0xff]  ;;  %v314_v28 = vld [vmem:[%s1783_s10 + $0x70] sm:$0xff]  ;;  %v315_v29 = vld [vmem:[%s1783_s10 + $0x78] sm:$0xff] }
  0x1a   : > { %1377 = vmatpush3.msra.mxu1 %v546_v6  ;;  %1348 = vmatmul.mubr.msk.f32.gmra.mxu0 %vm325_vm0, %v303_v11  ;;  %v538_v30 = vld [vmem:[%s2066_s3 + $0x18] sm:$0xff]  ;;  %v537_v31 = vld [vmem:[%s2066_s3 + $0x10] sm:$0xff]  ;;  %v536_v32 = vld [vmem:[%s2066_s3 + $0x8] sm:$0xff] }
  0x1b   : > { %1378 = vmatprep.subr.mxu1 %v545_v10  ;;  %1350 = vmatprep.mubr.msk.f32.mxu0 %vm325_vm0, %v304_v13  ;;  %v535_v33 = vld [vmem:[%s2066_s3] sm:$0xff]  ;;  %v734_v34 = vld [vmem:[%s2068_s5 + $0x78] sm:$0xff]  ;;  %v733_v35 = vld [vmem:[%s2068_s5 + $0x70] sm:$0xff] }
  0x1c   : > { %1379 = vmatpush3.msra.mxu1 %v545_v10  ;;  %1424 = vmatprep.subr.mxu0 %v734_v34  ;;  %v732_v36 = vld [vmem:[%s2068_s5 + $0x68] sm:$0xff]  ;;  %v731_v37 = vld [vmem:[%s2068_s5 + $0x60] sm:$0xff]  ;;  %v730_v38 = vld [vmem:[%s2068_s5 + $0x58] sm:$0xff] }
  0x1d   : > { %1380 = vmatprep.subr.mxu1 %v544_v12  ;;  %1425 = vmatpush3.msra.mxu0 %v734_v34  ;;  %v729_v39 = vld [vmem:[%s2068_s5 + $0x50] sm:$0xff]  ;;  %v728_v40 = vld [vmem:[%s2068_s5 + $0x48] sm:$0xff]  ;;  %v727_v41 = vld [vmem:[%s2068_s5 + $0x40] sm:$0xff] }
  0x1e   : > { %1381 = vmatpush3.msra.mxu1 %v544_v12  ;;  %1351 = vmatmul.mubr.msk.f32.gmra.mxu0 %vm325_vm0, %v305_v15  ;;  %v726_v42 = vld [vmem:[%s2068_s5 + $0x38] sm:$0xff]  ;;  %v725_v43 = vld [vmem:[%s2068_s5 + $0x30] sm:$0xff]  ;;  %v724_v44 = vld [vmem:[%s2068_s5 + $0x28] sm:$0xff] }
  0x1f   : > { %1382 = vmatprep.subr.mxu1 %v543_v14  ;;  %1353 = vmatprep.mubr.msk.f32.mxu0 %vm325_vm0, %v306_v17  ;;  %v723_v45 = vld [vmem:[%s2068_s5 + $0x20] sm:$0xff]  ;;  %v722_v46 = vld [vmem:[%s2068_s5 + $0x18] sm:$0xff] }
  0x20   : > { %1383 = vmatpush3.msra.mxu1 %v543_v14  ;;  %1426 = vmatprep.subr.mxu0 %v733_v35  ;;  %v1219_v47 = vld [vmem:[%s2065_s2] ss:$0 sm:$0xff] }
  0x21   : > { %1384 = vmatprep.subr.mxu1 %v542_v16  ;;  %1427 = vmatpush3.msra.mxu0 %v733_v35  ;;  %v719_v34 = vld [vmem:[%s2068_s5] sm:$0xff] }
  0x22   : > { %1385 = vmatpush3.msra.mxu1 %v542_v16  ;;  %1354 = vmatmul.mubr.msk.f32.gmra.mxu0 %vm325_vm0, %v307_v19  ;;  %v1236_v35 = vld [vmem:[%s2067_s4] ss:$0 sm:$0xff] }
  0x23   : > { %1386 = vmatprep.subr.mxu1 %v541_v18  ;;  %1356 = vmatprep.mubr.msk.f32.mxu0 %vm325_vm0, %v308_v21 }
  0x24   : > { %1387 = vmatpush3.msra.mxu1 %v541_v18  ;;  %1428 = vmatprep.subr.mxu0 %v732_v36 }
  0x25   : > { %1388 = vmatprep.subr.mxu1 %v540_v20  ;;  %1429 = vmatpush3.msra.mxu0 %v732_v36 }
  0x26   : > { %1389 = vmatpush3.msra.mxu1 %v540_v20  ;;  %1357 = vmatmul.mubr.msk.f32.gmra.mxu0 %vm325_vm0, %v309_v23 }
  0x27   : > { %1390 = vmatprep.subr.mxu1 %v539_v22  ;;  %1359 = vmatprep.mubr.msk.f32.mxu0 %vm325_vm0, %v310_v24 }
  0x28   : > { %1391 = vmatpush3.msra.mxu1 %v539_v22  ;;  %1430 = vmatprep.subr.mxu0 %v731_v37 }
  0x29   : > { %1392 = vmatprep.subr.mxu1 %v538_v30  ;;  %1431 = vmatpush3.msra.mxu0 %v731_v37 }
  0x2a   : > { %1360 = vmatmul.mubr.msk.f32.gmra.mxu0 %vm325_vm0, %v311_v25  ;;  %1393 = vmatpush3.msra.mxu1 %v538_v30 }
  0x2b   : > { %1362 = vmatprep.mubr.msk.f32.mxu0 %vm325_vm0, %v312_v26  ;;  %1394 = vmatprep.subr.mxu1 %v537_v31 }
  0x2c   : > { %1395 = vmatpush3.msra.mxu1 %v537_v31  ;;  %1432 = vmatprep.subr.mxu0 %v730_v38 }
  0x2d   : > { %1396 = vmatprep.subr.mxu1 %v536_v32  ;;  %1433 = vmatpush3.msra.mxu0 %v730_v38 }
  0x2e   : > { %1363 = vmatmul.mubr.msk.f32.gmra.mxu0 %vm325_vm0, %v313_v27  ;;  %1397 = vmatpush3.msra.mxu1 %v536_v32  ;;  %v721_v32 = vld [vmem:[%s2068_s5 + $0x10] sm:$0xff] }
  0x2f   : > { %1365 = vmatprep.mubr.msk.f32.mxu0 %vm325_vm0, %v314_v28  ;;  %1398 = vmatprep.subr.mxu1 %v535_v33 }
  0x30   : > { %1399 = vmatpush3.msra.mxu1 %v535_v33  ;;  %1434 = vmatprep.subr.mxu0 %v729_v39  ;;  %v720_v33 = vld [vmem:[%s2068_s5 + $0x8] sm:$0xff] }
  0x31   : > { %1435 = vmatpush3.msra.mxu0 %v729_v39 }
  0x32   : > { %1366 = vmatmul.mubr.msk.f32.gmra.mxu0 %vm325_vm0, %v315_v29  ;;  %1436 = vmatprep.subr.mxu0 %v728_v40 }
  0x33   : > { %1437 = vmatpush3.msra.mxu0 %v728_v40 }
  0x34   : > { %1438 = vmatprep.subr.mxu0 %v727_v41 }
  0x35   : > { %1439 = vmatpush3.msra.mxu0 %v727_v41 }
  0x36   : > { %1440 = vmatprep.subr.mxu0 %v726_v42 }
  0x37   : > { %1441 = vmatpush3.msra.mxu0 %v726_v42 }
  0x38   : > { %1442 = vmatprep.subr.mxu0 %v725_v43 }
  0x39   : > { %1443 = vmatpush3.msra.mxu0 %v725_v43 }
  0x3a   : > { %1444 = vmatprep.subr.mxu0 %v724_v44 }
  0x3b   : > { %1445 = vmatpush3.msra.mxu0 %v724_v44 }
  0x3c   : > { %1446 = vmatprep.subr.mxu0 %v723_v45 }
  0x3d   : > { %1447 = vmatpush3.msra.mxu0 %v723_v45 }
  0x3e   : > { %1448 = vmatprep.subr.mxu0 %v722_v46 }
  0x3f   : > { %1449 = vmatpush3.msra.mxu0 %v722_v46 }
  0x40   : > { %1450 = vmatprep.subr.mxu0 %v721_v32 }
  0x41   : > { %1451 = vmatpush3.msra.mxu0 %v721_v32 }
  0x42   : > { %1452 = vmatprep.subr.mxu0 %v720_v33 }
  0x43   : > { %1453 = vmatpush3.msra.mxu0 %v720_v33 }
  0x44   : > { %1454 = vmatprep.subr.mxu0 %v719_v34 }
  0x45   : > { %1455 = vmatpush3.msra.mxu0 %v719_v34 }
  0xd6   : > { %v1346_v48 = vpop.f32.mrf.mxu0 }
  0xd7   : > { %v446_v49 = vadd.f32 %v1346_v48, %v1219_v47 }
  0xd8   : > { %v440_v50 = vpop.f32.mrf.mxu0 }
  0xd9   : > { %v441_v51 = vadd.f32 %v1219_v47, %v440_v50  ;;  %v520_v54 = vmax.f32 %v446_v49, 0.0 }
  0xda   : > { %v1349_v52 = vpop.f32.mrf.mxu0 }
  0xdb   : > { %v519_v53 = vmax.f32 %v441_v51, 0.0  ;;  %v456_v55 = vadd.f32 %v1349_v52, %v1219_v47 }
  0xdc   : > { %v450_v56 = vpop.f32.mrf.mxu0 }
  0xdd   : > { %v451_v57 = vadd.f32 %v1219_v47, %v450_v56  ;;  %1400 = vmatprep.mubr.f32.mxu1 %v519_v53  ;;  %v522_v60 = vmax.f32 %v456_v55, 0.0 }
  0xde   : > { %v1352_v58 = vpop.f32.mrf.mxu0  ;;  %1401 = vmatmul.mubr.f32.vlgmr.msra.gmra.mxu1 %v520_v54 }
  0xdf   : > { %v521_v59 = vmax.f32 %v451_v57, 0.0  ;;  %v466_v61 = vadd.f32 %v1352_v58, %v1219_v47 }
  0xe0   : > { %v460_v62 = vpop.f32.mrf.mxu0 }
  0xe1   : > { %v461_v63 = vadd.f32 %v1219_v47, %v460_v62  ;;  %1403 = vmatprep.mubr.f32.mxu1 %v521_v59  ;;  %v524_v2 = vmax.f32 %v466_v61, 0.0 }
  0xe2   : > { %v1355_v0 = vpop.f32.mrf.mxu0  ;;  %1404 = vmatmul.mubr.f32.gmra.mxu1 %v522_v60 }
  0xe3   : > { %v523_v1 = vmax.f32 %v461_v63, 0.0  ;;  %v476_v3 = vadd.f32 %v1355_v0, %v1219_v47 }
  0xe4   : > { %v470_v4 = vpop.f32.mrf.mxu0 }
  0xe5   : > { %v471_v5 = vadd.f32 %v1219_v47, %v470_v4  ;;  %1406 = vmatprep.mubr.f32.mxu1 %v523_v1  ;;  %v526_v8 = vmax.f32 %v476_v3, 0.0 }
  0xe6   : > { %v1358_v6 = vpop.f32.mrf.mxu0  ;;  %1407 = vmatmul.mubr.f32.gmra.mxu1 %v524_v2 }
  0xe7   : > { %v525_v7 = vmax.f32 %v471_v5, 0.0  ;;  %v486_v9 = vadd.f32 %v1358_v6, %v1219_v47 }
  0xe8   : > { %v480_v10 = vpop.f32.mrf.mxu0 }
  0xe9   : > { %v481_v11 = vadd.f32 %v1219_v47, %v480_v10  ;;  %1409 = vmatprep.mubr.f32.mxu1 %v525_v7  ;;  %v528_v14 = vmax.f32 %v486_v9, 0.0 }
  0xea   : > { %v1361_v12 = vpop.f32.mrf.mxu0  ;;  %1410 = vmatmul.mubr.f32.gmra.mxu1 %v526_v8 }
  0xeb   : > { %v527_v13 = vmax.f32 %v481_v11, 0.0  ;;  %v496_v15 = vadd.f32 %v1361_v12, %v1219_v47 }
  0xec   : > { %v490_v16 = vpop.f32.mrf.mxu0 }
  0xed   : > { %v491_v17 = vadd.f32 %v1219_v47, %v490_v16  ;;  %1412 = vmatprep.mubr.f32.mxu1 %v527_v13  ;;  %v530_v20 = vmax.f32 %v496_v15, 0.0 }
  0xee   : > { %v1364_v18 = vpop.f32.mrf.mxu0  ;;  %1413 = vmatmul.mubr.f32.gmra.mxu1 %v528_v14 }
  0xef   : > { %v529_v19 = vmax.f32 %v491_v17, 0.0  ;;  %v506_v21 = vadd.f32 %v1364_v18, %v1219_v47 }
  0xf0   : > { %v500_v22 = vpop.f32.mrf.mxu0 }
  0xf1   : > { %v501_v23 = vadd.f32 %v1219_v47, %v500_v22  ;;  %1415 = vmatprep.mubr.f32.mxu1 %v529_v19  ;;  %v532_v26 = vmax.f32 %v506_v21, 0.0 }
  0xf2   : > { %v1367_v24 = vpop.f32.mrf.mxu0  ;;  %1416 = vmatmul.mubr.f32.gmra.mxu1 %v530_v20  ;;  %v1910_v20 = vld [vmem:[%s2069_s6] ss:$0 sm:$0xff] }
  0xf3   : > { %v531_v25 = vmax.f32 %v501_v23, 0.0  ;;  %v516_v27 = vadd.f32 %v1367_v24, %v1219_v47 }
  0xf4   : > { %v510_v28 = vpop.f32.mrf.mxu0 }
  0xf5   : > { %v511_v29 = vadd.f32 %v1219_v47, %v510_v28  ;;  %1418 = vmatprep.mubr.f32.mxu1 %v531_v25  ;;  %v534_v31 = vmax.f32 %v516_v27, 0.0 }
  0xf6   : > { %1419 = vmatmul.mubr.f32.gmra.mxu1 %v532_v26 }
  0xf7   : > { %v533_v30 = vmax.f32 %v511_v29, 0.0 }
  0xf9   : > { %1421 = vmatprep.mubr.f32.mxu1 %v533_v30 }
  0xfa   : > { %1422 = vmatmul.mubr.f32.gmra.mxu1 %v534_v31 }
 0x19e   : > { %v1402_v36 = vpop.f32.mrf.mxu1 }
 0x19f   : > { %v630_v37 = vadd.f32 %v1402_v36, %v1236_v35 }
 0x1a0   : > { %v624_v38 = vpop.f32.mrf.mxu1 }
 0x1a1   : > { %v625_v39 = vadd.f32 %v1236_v35, %v624_v38  ;;  %v704_v42 = vmax.f32 %v630_v37, 0.0 }
 0x1a2   : > { %v1405_v40 = vpop.f32.mrf.mxu1 }
 0x1a3   : > { %v703_v41 = vmax.f32 %v625_v39, 0.0  ;;  %v640_v43 = vadd.f32 %v1405_v40, %v1236_v35 }
 0x1a4   : > { %v634_v44 = vpop.f32.mrf.mxu1 }
 0x1a5   : > { %v635_v45 = vadd.f32 %v1236_v35, %v634_v44  ;;  %1456 = vmatprep.mubr.f32.mxu0 %v703_v41  ;;  %v706_v48 = vmax.f32 %v640_v43, 0.0 }
 0x1a6   : > { %v1408_v46 = vpop.f32.mrf.mxu1  ;;  %1457 = vmatmul.mubr.f32.vlgmr.msra.gmra.mxu0 %v704_v42 }
 0x1a7   : > { %v705_v47 = vmax.f32 %v635_v45, 0.0  ;;  %v650_v49 = vadd.f32 %v1408_v46, %v1236_v35 }
 0x1a8   : > { %v644_v50 = vpop.f32.mrf.mxu1 }
 0x1a9   : > { %v645_v51 = vadd.f32 %v1236_v35, %v644_v50  ;;  %1459 = vmatprep.mubr.f32.mxu0 %v705_v47  ;;  %v708_v54 = vmax.f32 %v650_v49, 0.0 }
 0x1aa   : > { %v1411_v52 = vpop.f32.mrf.mxu1  ;;  %1460 = vmatmul.mubr.f32.gmra.mxu0 %v706_v48 }
 0x1ab   : > { %v707_v53 = vmax.f32 %v645_v51, 0.0  ;;  %v660_v55 = vadd.f32 %v1411_v52, %v1236_v35 }
 0x1ac   : > { %v654_v56 = vpop.f32.mrf.mxu1 }
 0x1ad   : > { %v655_v57 = vadd.f32 %v1236_v35, %v654_v56  ;;  %1462 = vmatprep.mubr.f32.mxu0 %v707_v53  ;;  %v710_v60 = vmax.f32 %v660_v55, 0.0 }
 0x1ae   : > { %v1414_v58 = vpop.f32.mrf.mxu1  ;;  %1463 = vmatmul.mubr.f32.gmra.mxu0 %v708_v54 }
 0x1af   : > { %v709_v59 = vmax.f32 %v655_v57, 0.0  ;;  %v670_v61 = vadd.f32 %v1414_v58, %v1236_v35 }
 0x1b0   : > { %v664_v62 = vpop.f32.mrf.mxu1 }
 0x1b1   : > { %v665_v63 = vadd.f32 %v1236_v35, %v664_v62  ;;  %1465 = vmatprep.mubr.f32.mxu0 %v709_v59  ;;  %v712_v2 = vmax.f32 %v670_v61, 0.0 }
 0x1b2   : > { %v1417_v0 = vpop.f32.mrf.mxu1  ;;  %1466 = vmatmul.mubr.f32.gmra.mxu0 %v710_v60 }
 0x1b3   : > { %v711_v1 = vmax.f32 %v665_v63, 0.0  ;;  %v680_v3 = vadd.f32 %v1417_v0, %v1236_v35 }
 0x1b4   : > { %v674_v4 = vpop.f32.mrf.mxu1 }
 0x1b5   : > { %v675_v5 = vadd.f32 %v1236_v35, %v674_v4  ;;  %1468 = vmatprep.mubr.f32.mxu0 %v711_v1  ;;  %v714_v8 = vmax.f32 %v680_v3, 0.0 }
 0x1b6   : > { %v1420_v6 = vpop.f32.mrf.mxu1  ;;  %1469 = vmatmul.mubr.f32.gmra.mxu0 %v712_v2 }
 0x1b7   : > { %v713_v7 = vmax.f32 %v675_v5, 0.0  ;;  %v690_v9 = vadd.f32 %v1420_v6, %v1236_v35 }
 0x1b8   : > { %v684_v10 = vpop.f32.mrf.mxu1 }
 0x1b9   : > { %v685_v11 = vadd.f32 %v1236_v35, %v684_v10  ;;  %1471 = vmatprep.mubr.f32.mxu0 %v713_v7  ;;  %v716_v14 = vmax.f32 %v690_v9, 0.0 }
 0x1ba   : > { %v1423_v12 = vpop.f32.mrf.mxu1  ;;  %1472 = vmatmul.mubr.f32.gmra.mxu0 %v714_v8 }
 0x1bb   : > { %v715_v13 = vmax.f32 %v685_v11, 0.0  ;;  %v700_v15 = vadd.f32 %v1423_v12, %v1236_v35 }
 0x1bc   : > { %v694_v16 = vpop.f32.mrf.mxu1 }
 0x1bd   : > { %v695_v17 = vadd.f32 %v1236_v35, %v694_v16  ;;  %1474 = vmatprep.mubr.f32.mxu0 %v715_v13  ;;  %v718_v19 = vmax.f32 %v700_v15, 0.0 }
 0x1be   : > { %1475 = vmatmul.mubr.f32.gmra.mxu0 %v716_v14 }
 0x1bf   : > { %v717_v18 = vmax.f32 %v695_v17, 0.0 }
 0x1c1   : > { %1477 = vmatprep.mubr.f32.mxu0 %v717_v18 }
 0x1c2   : > { %1478 = vmatmul.mubr.f32.gmra.mxu0 %v718_v19 }
 0x266   : > { %v1458_v21 = vpop.f32.mrf.mxu0 }
 0x267   : > { %v814_v22 = vadd.f32 %v1458_v21, %v1910_v20 }
 0x268   : > { %v808_v23 = vpop.f32.mrf.mxu0 }
 0x269   : > { %1568 = vtanh.f32 %v814_v22  ;;  %v809_v24 = vadd.f32 %v1910_v20, %v808_v23 }
 0x26a   : > { %v1461_v25 = vpop.f32.mrf.mxu0 }
 0x26b   : > { %1570 = vtanh.f32 %v809_v24  ;;  %v824_v26 = vadd.f32 %v1461_v25, %v1910_v20 }
 0x26c   : > { %v818_v27 = vpop.f32.mrf.mxu0 }
 0x26d   : > { %1572 = vtanh.f32 %v824_v26  ;;  %v819_v28 = vadd.f32 %v1910_v20, %v818_v27 }
 0x26e   : > { %v1464_v29 = vpop.f32.mrf.mxu0 }
 0x26f   : > { %1574 = vtanh.f32 %v819_v28  ;;  %v834_v30 = vadd.f32 %v1464_v29, %v1910_v20 }
 0x270   : > { %v828_v31 = vpop.f32.mrf.mxu0 }
 0x271   : > { %1576 = vtanh.f32 %v834_v30  ;;  %v829_v32 = vadd.f32 %v1910_v20, %v828_v31 }
 0x272   : > { %v1467_v33 = vpop.f32.mrf.mxu0 }
 0x273   : > { %1578 = vtanh.f32 %v829_v32  ;;  %v844_v34 = vadd.f32 %v1467_v33, %v1910_v20 }
 0x274   : > { %v838_v35 = vpop.f32.mrf.mxu0 }
 0x275   : > { %1580 = vtanh.f32 %v844_v34  ;;  %v839_v36 = vadd.f32 %v1910_v20, %v838_v35 }
 0x276   : > { %v1569_v37 = vpop.eup %1568  ;;  %v1470_v38 = vpop.f32.mrf.mxu0 }
 0x277   : > { %v904_v39 = vmul.f32 2.0, %v1569_v37  ;;  %1582 = vtanh.f32 %v839_v36  ;;  %v854_v40 = vadd.f32 %v1470_v38, %v1910_v20 }
 0x278   : > { %v1571_v41 = vpop.eup %1570  ;;  %v848_v42 = vpop.f32.mrf.mxu0 }
 0x279   : > { %921 = vst.msk [vmem:[%s1922_s24 + $0x8] sm:$0xff] %vm919_vm1, %v904_v39  ;;  %v903_v43 = vmul.f32 2.0, %v1571_v41  ;;  %1584 = vtanh.f32 %v854_v40  ;;  %v849_v44 = vadd.f32 %v1910_v20, %v848_v42 }
 0x27a   : > { %v1573_v45 = vpop.eup %1572  ;;  %v1473_v46 = vpop.f32.mrf.mxu0 }
 0x27b   : > { %920 = vst.msk [vmem:[%s1922_s24] sm:$0xff] %vm919_vm1, %v903_v43  ;;  %v906_v47 = vmul.f32 2.0, %v1573_v45  ;;  %1586 = vtanh.f32 %v849_v44  ;;  %v864_v48 = vadd.f32 %v1473_v46, %v1910_v20 }
 0x27c   : > { %v1575_v49 = vpop.eup %1574  ;;  %v858_v50 = vpop.f32.mrf.mxu0 }
 0x27d   : > { %923 = vst.msk [vmem:[%s1922_s24 + $0x18] sm:$0xff] %vm919_vm1, %v906_v47  ;;  %v905_v51 = vmul.f32 2.0, %v1575_v49  ;;  %1588 = vtanh.f32 %v864_v48  ;;  %v859_v52 = vadd.f32 %v1910_v20, %v858_v50 }
 0x27e   : > { %v1577_v53 = vpop.eup %1576  ;;  %v1476_v54 = vpop.f32.mrf.mxu0 }
 0x27f   : > { %922 = vst.msk [vmem:[%s1922_s24 + $0x10] sm:$0xff] %vm919_vm1, %v905_v51  ;;  %v908_v55 = vmul.f32 2.0, %v1577_v53  ;;  %1590 = vtanh.f32 %v859_v52  ;;  %v874_v56 = vadd.f32 %v1476_v54, %v1910_v20 }
 0x280   : > { %v1579_v57 = vpop.eup %1578  ;;  %v868_v58 = vpop.f32.mrf.mxu0 }
 0x281   : > { %925 = vst.msk [vmem:[%s1922_s24 + $0x28] sm:$0xff] %vm919_vm1, %v908_v55  ;;  %v907_v59 = vmul.f32 2.0, %v1579_v57  ;;  %1592 = vtanh.f32 %v874_v56  ;;  %v869_v60 = vadd.f32 %v1910_v20, %v868_v58 }
 0x282   : > { %v1581_v61 = vpop.eup %1580  ;;  %v1479_v62 = vpop.f32.mrf.mxu0 }
 0x283   : > { %924 = vst.msk [vmem:[%s1922_s24 + $0x20] sm:$0xff] %vm919_vm1, %v907_v59  ;;  %v910_v63 = vmul.f32 2.0, %v1581_v61  ;;  %1594 = vtanh.f32 %v869_v60  ;;  %v884_v0 = vadd.f32 %v1479_v62, %v1910_v20 }
 0x284   : > { %v1583_v1 = vpop.eup %1582  ;;  %v878_v2 = vpop.f32.mrf.mxu0 }
 0x285   : > { %927 = vst.msk [vmem:[%s1922_s24 + $0x38] sm:$0xff] %vm919_vm1, %v910_v63  ;;  %v909_v3 = vmul.f32 2.0, %v1583_v1  ;;  %1596 = vtanh.f32 %v884_v0  ;;  %v879_v4 = vadd.f32 %v1910_v20, %v878_v2 }
 0x286   : > { %v1585_v5 = vpop.eup %1584 }
 0x287   : > { %926 = vst.msk [vmem:[%s1922_s24 + $0x30] sm:$0xff] %vm919_vm1, %v909_v3  ;;  %v912_v6 = vmul.f32 2.0, %v1585_v5  ;;  %1598 = vtanh.f32 %v879_v4 }
 0x288   : > { %v1587_v7 = vpop.eup %1586 }
 0x289   : > { %929 = vst.msk [vmem:[%s1922_s24 + $0x48] sm:$0xff] %vm919_vm1, %v912_v6  ;;  %v911_v8 = vmul.f32 2.0, %v1587_v7 }
 0x28a   : > { %v1589_v9 = vpop.eup %1588 }
 0x28b   : > { %928 = vst.msk [vmem:[%s1922_s24 + $0x40] sm:$0xff] %vm919_vm1, %v911_v8  ;;  %v914_v10 = vmul.f32 2.0, %v1589_v9 }
 0x28c   : > { %v1591_v11 = vpop.eup %1590 }
 0x28d   : > { %931 = vst.msk [vmem:[%s1922_s24 + $0x58] sm:$0xff] %vm919_vm1, %v914_v10  ;;  %v913_v12 = vmul.f32 2.0, %v1591_v11 }
 0x28e   : > { %v1593_v13 = vpop.eup %1592 }
 0x28f   : > { %930 = vst.msk [vmem:[%s1922_s24 + $0x50] sm:$0xff] %vm919_vm1, %v913_v12  ;;  %v916_v14 = vmul.f32 2.0, %v1593_v13 }
 0x290   : > { %v1595_v15 = vpop.eup %1594 }
 0x291   : > { %933 = vst.msk [vmem:[%s1922_s24 + $0x68] sm:$0xff] %vm919_vm1, %v916_v14  ;;  %v915_v16 = vmul.f32 2.0, %v1595_v15 }
 0x292   : > { %v1597_v17 = vpop.eup %1596 }
 0x293   : > { %932 = vst.msk [vmem:[%s1922_s24 + $0x60] sm:$0xff] %vm919_vm1, %v915_v16  ;;  %v918_v18 = vmul.f32 2.0, %v1597_v17  ;;  %942 = sbr.rel (!%p1753_p4) target bundleno = 705 (0x2c1), region = 52 }
 0x294   : > { %v1599_v19 = vpop.eup %1598 }
 0x295   : > { %935 = vst.msk [vmem:[%s1922_s24 + $0x78] sm:$0xff] %vm919_vm1, %v918_v18  ;;  %v917_v20 = vmul.f32 2.0, %v1599_v19 }
 0x297   : > { %934 = vst.msk [vmem:[%s1922_s24 + $0x70] sm:$0xff] %vm919_vm1, %v917_v20 }
 0x298   : > { %s2079_s12 = smov (!%p945_p8, %s944_s12), 16 }
 0x299   : > { %s1240_s18 = sshll.u32 %s2079_s12, 7 }
 0x29a   : > { %p1243_p9 = scmp.eq.s32.totalorder %s1240_s18, 0 }
 0x29b   : > { %s1976_s10 = sshrl.u32 (!%p1243_p9), %s2079_s12, 4 }
 0x29c   : > { %953 = sbr.rel (%p1243_p9) target bundleno = 705 (0x2c1), region = 56  ;;  %p1244_p10 = scmp.le.s32.totalorder (!%p1243_p9), %s1976_s10, 0 }
 0x2a1   : > { %1168 = sbr.rel (%p1244_p10) target bundleno = 688 (0x2b0), region = 132  ;;  %s2072_s27 = smov (!%p1244_p10), %s1970_s17 }
 0x2a2   : > { %s2073_s9 = smov (!%p1244_p10), %s1922_s24  ;;  %s1985_s14 = smov (!%p1244_p10), 0  }
 0x2a3   : > { %s1987_s19 = smov (!%p1244_p10), 0  }
 0x2a6 LB: >> { %v1046_v21 = vld [vmem:[%s1662_s9] sm:$0xff]  ;;  %v1048_v22 = vld [vmem:[%s1662_s9 + $0x8] sm:$0xff]  ;;  %v1050_v23 = vld [vmem:[%s1662_s9 + $0x10] sm:$0xff]  ;;  %s1078_s20 = sadd.s32 1, %s1666_s14  ;;  %s1040_s19 = sadd.s32 1, %s1670_s19   ;;  %s1670_s19 = sphi %s1987_s19, %s1040_s19   ;;  %s1666_s14 = sphi %s1985_s14, %s2074_s14   ;;  %s1662_s9 = sphi %s2073_s9, %s1083_s9   ;;  %s1658_s27 = sphi %s2072_s27, %s1084_s27  }
 0x2a7   : >> { %1047 = vst [vmem:[%s1658_s27] sm:$0xff] %v1046_v21  ;;  %1049 = vst [vmem:[%s1658_s27 + $0x8] sm:$0xff] %v1048_v22  ;;  %v1052_v24 = vld [vmem:[%s1662_s9 + $0x18] sm:$0xff]  ;;  %v1054_v25 = vld [vmem:[%s1662_s9 + $0x20] sm:$0xff]  ;;  %p1079_p11 = scmp.ge.s32.totalorder %s1078_s20, %s1976_s10  ;;  %p1039_p12 = scmp.ge.s32.totalorder %s1040_s19, %s1976_s10 }
 0x2a8   : >> { %1051 = vst [vmem:[%s1658_s27 + $0x10] sm:$0xff] %v1050_v23  ;;  %v1056_v26 = vld [vmem:[%s1662_s9 + $0x28] sm:$0xff]  ;;  %1053 = vst [vmem:[%s1658_s27 + $0x18] sm:$0xff] %v1052_v24  ;;  %v1058_v27 = vld [vmem:[%s1662_s9 + $0x30] sm:$0xff] }
 0x2a9   : >> { %1055 = vst [vmem:[%s1658_s27 + $0x20] sm:$0xff] %v1054_v25  ;;  %1057 = vst [vmem:[%s1658_s27 + $0x28] sm:$0xff] %v1056_v26  ;;  %v1060_v28 = vld [vmem:[%s1662_s9 + $0x38] sm:$0xff]  ;;  %v1062_v29 = vld [vmem:[%s1662_s9 + $0x40] sm:$0xff]  ;;  %s2081_s20 = smov (%p1079_p11, %s1078_s20), 0 }
 0x2aa   : >> { %1059 = vst [vmem:[%s1658_s27 + $0x30] sm:$0xff] %v1058_v27  ;;  %1061 = vst [vmem:[%s1658_s27 + $0x38] sm:$0xff] %v1060_v28  ;;  %v1064_v30 = vld [vmem:[%s1662_s9 + $0x48] sm:$0xff]  ;;  %v1066_v31 = vld [vmem:[%s1662_s9 + $0x50] sm:$0xff]  ;;  %s1245_s21 = sshll.u32 %s2081_s20, 7  ;;  %s2074_s14 = smov %s2081_s20 }
 0x2ab   : >> { %1063 = vst [vmem:[%s1658_s27 + $0x40] sm:$0xff] %v1062_v29  ;;  %v1068_v32 = vld [vmem:[%s1662_s9 + $0x58] sm:$0xff]  ;;  %1065 = vst [vmem:[%s1658_s27 + $0x48] sm:$0xff] %v1064_v30  ;;  %v1070_v33 = vld [vmem:[%s1662_s9 + $0x60] sm:$0xff]  ;;  %1042 = sbr.rel (!%p1039_p12) target bundleno = 678 (0x2a6), region = 138 }
 0x2ac   : >> { %1067 = vst [vmem:[%s1658_s27 + $0x50] sm:$0xff] %v1066_v31  ;;  %1069 = vst [vmem:[%s1658_s27 + $0x58] sm:$0xff] %v1068_v32  ;;  %v1072_v34 = vld [vmem:[%s1662_s9 + $0x68] sm:$0xff]  ;;  %v1074_v35 = vld [vmem:[%s1662_s9 + $0x70] sm:$0xff] }
 0x2ad   : >> { %1071 = vst [vmem:[%s1658_s27 + $0x60] sm:$0xff] %v1070_v33  ;;  %1073 = vst [vmem:[%s1658_s27 + $0x68] sm:$0xff] %v1072_v34  ;;  %v1076_v36 = vld [vmem:[%s1662_s9 + $0x78] sm:$0xff]  ;;  %s1083_s9 = scalar_lea.vmem %s1922_s24, %s1245_s21 [#allocation2]  }
 0x2ae   : >> { %1075 = vst [vmem:[%s1658_s27 + $0x70] sm:$0xff] %v1074_v35  ;;  %1077 = vst [vmem:[%s1658_s27 + $0x78] sm:$0xff] %v1076_v36  ;;  %s1084_s27 = scalar_lea.vmem %s1970_s17, %s1245_s21  }
 0x2b0 PF: > { %s2045_s22 = sand.u32 15, %s2079_s12   ;;  %s1256_s23 = sshll.u32 %s1976_s10, 7 }
 0x2b1   : > { %s1089_s26 = scalar_lea.vmem %s1922_s24, %s1256_s23 [#allocation2]   ;;  %s1091_s29 = scalar_lea.vmem %s1970_s17, %s1256_s23  }
 0x2b2   : > { %p1250_p13 = scmp.le.s32.totalorder %s2045_s22, 0 }
 0x2b3   : > { %s1672_s30 = smov (!%p1250_p13), %s1091_s29   ;;  %s1676_s11 = smov (!%p1250_p13), %s1089_s26  }
 0x2b4   : > { %1182 = sbr.rel (%p1250_p13) target bundleno = 705 (0x2c1), region = 143  ;;  %s1680_s13 = smov (!%p1250_p13), 0  }
 0x2b5   : > { %s1684_s15 = smov (!%p1250_p13), 0  }
 0x2b9 LB: >> { %v1101_v37 = vld [vmem:[%s1678_s11] sm:$0xff]  ;;  %s1103_s12 = sadd.s32 1, %s1682_s13  ;;  %s1095_s15 = sadd.s32 1, %s1686_s15   ;;  %s1686_s15 = sphi %s1684_s15, %s1095_s15   ;;  %s1682_s13 = sphi %s1680_s13, %s1681_s13   ;;  %s1678_s11 = sphi %s1676_s11, %s1108_s11   ;;  %s1674_s30 = sphi %s1672_s30, %s1109_s30  }
 0x2ba   : >> { %1102 = vst [vmem:[%s1674_s30] sm:$0xff] %v1101_v37  ;;  %p1104_p0 = scmp.ge.s32.totalorder %s1103_s12, %s2045_s22  ;;  %p1094_p1 = scmp.ge.s32.totalorder %s1095_s15, %s2045_s22 }
 0x2bc   : >> { %s2083_s12 = smov (%p1104_p0, %s1103_s12), 0  ;;  %1097 = sbr.rel (!%p1094_p1) target bundleno = 697 (0x2b9), region = 149 }
 0x2bd   : >> { %s1251_s24 = sshll.u32 %s2083_s12, 3  ;;  %s1681_s13 = smov %s2083_s12  }
 0x2be   : >> { %s1108_s11 = scalar_lea.vmem %s1089_s26, %s1251_s24 [#allocation2]   ;;  %s1109_s30 = scalar_lea.vmem %s1091_s29, %s1251_s24  }
 0x2c1 PF: > { %p14_p2 = scmp.ge.s32.totalorder %s1743_s28, 5   ;;  %s2075_s24 = smov %s1650_s25 }
 0x2c2   : > { %s2076_s25 = smov %s1751_s8  ;;  %s2077_s26 = smov %s1743_s28 }
 0x2c3   :  { %16 = sbr.rel (!%p14_p2) target bundleno = 2 (0x2), region = 160 }

</bundles_post_ra>
